<compile_context>
chip_gen: v6e
topology: v6e:2x2x1
jax: 0.10.0
libtpu: 0.0.40
codegen_flags: <defaults>
</compile_context>

<pallas_src>
import functools

import jax
import jax.numpy as jnp
from jax.experimental import pallas as pl
from jax.experimental.pallas import tpu as pltpu


def _round_up(v, m):
    return -(-v // m) * m


def _round_down(v, m):
    return (v // m) * m


# Cap on the lane-tile width.  Keeps the unrolled 128-lane chunk loop short
# (<= 16 chunks) while still giving lane-dense, multi-MiB blocks (rows grow to
# fill the byte budget instead).
_MAX_LANE_TILE = 2048


def _choose_tiles(rows, hw, itemsize, *, target_block_bytes, min_sublane):
    """Pick (row_tile, hw_tile) for the flattened (B*C, H*W) layout.

    hw_tile : the full HW extent when it fits under _MAX_LANE_TILE (single
              reduction step), else _MAX_LANE_TILE (a 128-multiple).
    row_tile: a multiple of min_sublane (or the full rows dim when rows is
              small), sized so one x block stays <= target_block_bytes and,
              when rows allow, so there are >= 2 row tiles (keeps both v7x
              TensorCores busy on the "parallel" grid axis).
    """
    thw = hw if hw <= _MAX_LANE_TILE else _MAX_LANE_TILE
    thw_pad = _round_up(thw, 128)                       # lane padding in VMEM

    unit = rows if rows <= min_sublane else min_sublane
    if rows <= unit:
        return rows, thw                                # single, full row tile

    max_tr = max(unit,
                 _round_down(target_block_bytes // (thw_pad * itemsize), unit))
    two_tile_cap = _round_up(-(-rows // 2), unit)       # >= 2 row tiles
    tr = max(unit, min(max_tr, two_tile_cap))
    return tr, thw


def _avg_max_pool_kernel(x_ref, sum_ref, max_ref, sum_acc, max_acc, *,
                         hw_tile, valid_last, chunked):
    """Running global sum / max over the HW (lane) axis of a (rows, HW) view.

    grid = (row_tiles, hw_tiles); HW is the reduction ("arbitrary") axis.
    With `chunked` (hw_tile % 128 == 0) the accumulators hold 128 per-lane
    partials, so each step is pure VALU work and the single cross-lane reduce
    runs once in the k == last finalize.  `valid_last` (> 0) is the static
    number of valid lanes in the ragged final HW block.
    """
    k = pl.program_id(1)
    last = pl.num_programs(1) - 1

    @pl.when(k == 0)
    def _init():
        sum_acc[...] = jnp.zeros_like(sum_acc)
        max_acc[...] = jnp.full_like(max_acc, -jnp.inf)

    def accumulate(lanes_valid):
        # `lanes_valid` is a static Python int (== hw_tile for full blocks).
        if chunked:
            part_s = None
            part_m = None
            lane = None
            for j in range(hw_tile // 128):
                lo = j * 128
                if lo >= lanes_valid:
                    break                                # fully padded chunk
                c = x_ref[:, lo:lo + 128].astype(jnp.float32)
                if lo + 128 > lanes_valid:               # partially padded
                    if lane is None:
                        lane = jax.lax.broadcasted_iota(jnp.int32, (1, 128), 1)
                    valid = lane < (lanes_valid - lo)
                    cs = jnp.where(valid, c, 0.0)
                    cm = jnp.where(valid, c, -jnp.inf)
                else:
                    cs = c
                    cm = c
                part_s = cs if part_s is None else part_s + cs
                part_m = cm if part_m is None else jnp.maximum(part_m, cm)
        else:
            c = x_ref[...].astype(jnp.float32)
            if lanes_valid < hw_tile:
                lane = jax.lax.broadcasted_iota(jnp.int32, (1, hw_tile), 1)
                valid = lane < lanes_valid
                cs = jnp.where(valid, c, 0.0)
                cm = jnp.where(valid, c, -jnp.inf)
            else:
                cs = c
                cm = c
            part_s = jnp.sum(cs, axis=-1, keepdims=True)
            part_m = jnp.max(cm, axis=-1, keepdims=True)

        sum_acc[...] = sum_acc[...] + part_s
        max_acc[...] = jnp.maximum(max_acc[...], part_m)

    if valid_last > 0:
        # Only the ragged final HW block pays for masking (boundary reads are
        # undefined, not zero); all earlier blocks take the unmasked path.
        @pl.when(k != last)
        def _full_block():
            accumulate(hw_tile)

        @pl.when(k == last)
        def _ragged_block():
            accumulate(valid_last)
    else:
        accumulate(hw_tile)

    @pl.when(k == last)
    def _finalize():
        if chunked:
            sum_ref[...] = jnp.sum(sum_acc[...], axis=-1, keepdims=True)
            max_ref[...] = jnp.max(max_acc[...], axis=-1, keepdims=True)
        else:
            sum_ref[...] = sum_acc[...]
            max_ref[...] = max_acc[...]


def channel_mask_unit_forward(x_nchw, conv_w, conv_b, gumbel_temp,
                              gumbel_noise=None, prev_mask_scalar=1.0, *,
                              target_block_bytes=8 << 20, _force_hw_tile=None):
    """ChannelMaskUnit.forward (ratio / reduction = 0 branch).

    x_nchw:  (B, C, H, W) float32 / bfloat16
    conv_w:  (O, C, 1, 1) float32  (PyTorch Conv2d weight layout)
    conv_b:  (O,)         float32
    gumbel_temp: python float > 0
    gumbel_noise: optional (B, O) array of (g1 - g2) gumbel noise, or None
    prev_mask_scalar: scalar hard_prev (non-ChannelMask branch of ChannelMask)

    For best end-to-end behaviour wrap the caller in jax.jit so the (B, C, H, W)
    -> (B*C, H*W) reshape stays metadata-only.
    """
    assert gumbel_temp > 0, "hard-mask sign test assumes gumbel_temp > 0"
    B, C, H, W = x_nchw.shape
    O = conv_w.shape[0]
    HW = H * W
    rows = B * C

    # Metadata-only reshape; x stays in its native dtype (bf16 halves HBM
    # traffic; the kernel upcasts each chunk to f32 for accumulation).
    x2d = x_nchw.reshape(rows, HW)
    itemsize = jnp.dtype(x2d.dtype).itemsize
    min_sublane = {4: 8, 2: 16, 1: 32}.get(itemsize, 8)

    tr, thw = _choose_tiles(rows, HW, itemsize,
                            target_block_bytes=target_block_bytes,
                            min_sublane=min_sublane)
    if _force_hw_tile is not None:                      # test/debug hook
        assert _force_hw_tile == HW or _force_hw_tile % 128 == 0
        thw = _force_hw_tile

    chunked = (thw % 128 == 0)
    valid_last = HW % thw                                # 0 => no ragged block
    grid = (pl.cdiv(rows, tr), pl.cdiv(HW, thw))
    acc_l = 128 if chunked else 1

    kernel = functools.partial(_avg_max_pool_kernel, hw_tile=thw,
                               valid_last=valid_last, chunked=chunked)

    # VMEM limit derived from the real footprint: double-buffered x blocks +
    # accumulators + (lane-padded) output buffers + headroom.
    thw_pad = _round_up(thw, 128)
    tr_rows_pad = _round_up(tr, min_sublane)
    tr_pad = _round_up(tr, 8)
    block_bytes = tr_rows_pad * thw_pad * itemsize
    vmem_limit = int(min(64 << 20,
                         max(16 << 20,
                             2 * block_bytes + 6 * tr_pad * 128 * 4 + (4 << 20))))

    cost = pl.CostEstimate(
        flops=int(2 * rows * HW),                        # adds + max-compares
        transcendentals=0,
        bytes_accessed=int(rows * HW * itemsize + 8 * rows))

    pooled_sum, pooled_max = pl.pallas_call(
        kernel,
        out_shape=(jax.ShapeDtypeStruct((rows, 1), jnp.float32),
                   jax.ShapeDtypeStruct((rows, 1), jnp.float32)),
        grid_spec=pltpu.PrefetchScalarGridSpec(
            num_scalar_prefetch=0,
            grid=grid,
            in_specs=[pl.BlockSpec((tr, thw), lambda r, k: (r, k))],
            out_specs=(pl.BlockSpec((tr, 1), lambda r, k: (r, 0)),
                       pl.BlockSpec((tr, 1), lambda r, k: (r, 0))),
            scratch_shapes=[pltpu.VMEM((tr, acc_l), jnp.float32),   # sum partials
                            pltpu.VMEM((tr, acc_l), jnp.float32)],  # max partials
        ),
        compiler_params=pltpu.CompilerParams(
            dimension_semantics=("parallel", "arbitrary"),
            vmem_limit_bytes=vmem_limit),
        cost_estimate=cost,
    )(x2d)

    # ---- tiny epilogue in plain JAX (O(B*C + B*O) work) ----
    avg_pool = pooled_sum.reshape(B, C) * jnp.float32(1.0 / HW)
    max_pool = pooled_max.reshape(B, C)
    w_mat = conv_w[:, :, 0, 0].astype(jnp.float32).T                # (C, O)
    bias = conv_b.astype(jnp.float32)
    # conv1(avg) + conv1(max) = (avg + max) @ W + 2*b   (1x1 conv == matmul)
    soft = (avg_pool + max_pool) @ w_mat + 2.0 * bias               # (B, O)
    if gumbel_noise is None:
        logits = soft
    else:
        logits = soft + gumbel_noise.reshape(B, O).astype(jnp.float32)
    # Gumbel straight-through forward value (temp > 0):
    #   hard = [sigmoid(logits / temp) >= 0.5] = [logits >= 0]
    hard = (logits >= 0.0).astype(jnp.float32)

    channel_soft = soft.reshape(B, O, 1, 1)    # PyTorch conv output (B, O, 1, 1)
    channel_hard = hard.reshape(B, O, 1, 1)

    # ChannelMask bookkeeping (scalar hard_prev branch).
    hp = jnp.float32(prev_mask_scalar)
    channel_inte_state = channel_hard.sum(axis=(1, 2, 3)) * hp      # (B,)
    active_channels = channel_hard.sum() * hp
    total_channels = jnp.float32(channel_hard.size) * hp

    return {
        "hard": channel_hard,
        "soft": channel_soft,
        "channel_inte_state": channel_inte_state,
        "active_channels": active_channels,
        "total_channels": total_channels,
    }


if __name__ == "__main__":
    def reference(x, conv_w, conv_b, gumbel_temp, gumbel_noise):
        B, C, H, W = x.shape
        xf = x.astype(jnp.float32)
        avg = xf.mean(axis=(2, 3))
        mx = xf.max(axis=(2, 3))
        wm = conv_w[:, :, 0, 0].astype(jnp.float32).T
        bias = conv_b.astype(jnp.float32)
        soft = (avg @ wm + bias) + (mx @ wm + bias)
        logits = soft if gumbel_noise is None else soft + gumbel_noise
        hard = (jax.nn.sigmoid(logits / gumbel_temp) >= 0.5).astype(jnp.float32)
        return soft, hard

    key = jax.random.PRNGKey(0)

    configs = [
        # (B, C, O, H, W, dtype,        noise, force_hw_tile)
        (2, 4, 4, 16, 16, jnp.float32,  False, None),   # chunked, HW % thw == 0
        (2, 4, 4, 12, 12, jnp.bfloat16, False, None),   # direct path (HW=144)
        (3, 4, 6, 20, 20, jnp.float32,  True,  128),    # ragged HW + ragged rows
    ]

    for idx, (B, C, O, H, W, dt, with_noise, fhw) in enumerate(configs):
        key, kx, kw, kb, kn = jax.random.split(key, 5)
        x = jax.random.normal(kx, (B, C, H, W), dtype=jnp.float32).astype(dt)
        conv_w = jax.random.normal(kw, (O, C, 1, 1), dtype=jnp.float32) * 0.5
        conv_b = jax.random.normal(kb, (O,), dtype=jnp.float32) * 0.1
        noise = (jax.random.normal(kn, (B, O), dtype=jnp.float32)
                 if with_noise else None)
        temp = 0.7

        out = channel_mask_unit_forward(x, conv_w, conv_b, gumbel_temp=temp,
                                        gumbel_noise=noise,
                                        prev_mask_scalar=1.0,
                                        _force_hw_tile=fhw)
        jax.block_until_ready(out)

        soft_ref, hard_ref = reference(x, conv_w, conv_b, temp, noise)
        assert jnp.allclose(out["soft"].reshape(B, O), soft_ref,
                            atol=2e-4, rtol=2e-4), f"soft mismatch (config {idx})"
        assert jnp.array_equal(out["hard"].reshape(B, O),
                               hard_ref), f"hard mismatch (config {idx})"

    print("KERNEL_OK")
</pallas_src>

<mosaic_0001>
module attributes {stable_mosaic.version = 11 : i64} {
  func.func @_avg_max_pool_kernel(%arg0: i32, %arg1: i32, %arg2: memref<8x256xf32, #tpu.memory_space<vmem>>, %arg3: memref<8x1xf32, #tpu.memory_space<vmem>>, %arg4: memref<8x1xf32, #tpu.memory_space<vmem>>, %arg5: memref<8x128xf32, #tpu.memory_space<vmem>>, %arg6: memref<8x128xf32, #tpu.memory_space<vmem>>) attributes {dimension_semantics = [#tpu.dimension_semantics<parallel>, #tpu.dimension_semantics<arbitrary>], iteration_bounds = array<i64: 1, 1>, scalar_prefetch = 0 : i64, scratch_operands = 2 : i64, tpu.core_type = #tpu.core_type<tc>, window_params = [{transform_indices = @transform_0, window_bounds = array<i64: 8, 256>}, {transform_indices = @transform_1, window_bounds = array<i64: 8, 1>}, {transform_indices = @transform_2, window_bounds = array<i64: 8, 1>}]} {
    %c0_i32 = arith.constant 0 : i32
    %0 = arith.cmpi eq, %arg1, %c0_i32 : i32
    %1 = arith.extui %0 : i1 to i32
    %c0_i32_0 = arith.constant 0 : i32
    %2 = arith.cmpi ne, %1, %c0_i32_0 : i32
    scf.if %2 {
      %cst = arith.constant 0.000000e+00 : f32
      %16 = vector.broadcast %cst : f32 to vector<8x128xf32>
      %c0_13 = arith.constant 0 : index
      %c0_14 = arith.constant 0 : index
      %17 = vector.load %arg5[%c0_13, %c0_14] : memref<8x128xf32, #tpu.memory_space<vmem>>, vector<8x128xf32>
      tpu.vector_store %arg5[%c0_13, %c0_14], %16 {strides = array<i32>} : memref<8x128xf32, #tpu.memory_space<vmem>>, vector<8x128xf32>,
      %cst_15 = arith.constant 0xFF800000 : f32
      %18 = vector.broadcast %cst_15 : f32 to vector<8x128xf32>
      %c0_16 = arith.constant 0 : index
      %c0_17 = arith.constant 0 : index
      %19 = vector.load %arg6[%c0_16, %c0_17] : memref<8x128xf32, #tpu.memory_space<vmem>>, vector<8x128xf32>
      tpu.vector_store %arg6[%c0_16, %c0_17], %18 {strides = array<i32>} : memref<8x128xf32, #tpu.memory_space<vmem>>, vector<8x128xf32>,
    } else {
    }
    %c0 = arith.constant 0 : index
    %c0_1 = arith.constant 0 : index
    %3 = vector.load %arg2[%c0, %c0_1] : memref<8x256xf32, #tpu.memory_space<vmem>>, vector<8x128xf32>
    %c0_2 = arith.constant 0 : index
    %c128 = arith.constant 128 : index
    %4 = vector.load %arg2[%c0_2, %c128] : memref<8x256xf32, #tpu.memory_space<vmem>>, vector<8x128xf32>
    %5 = arith.addf %3, %4 : vector<8x128xf32>
    %6 = arith.maximumf %3, %4 : vector<8x128xf32>
    %c0_3 = arith.constant 0 : index
    %c0_4 = arith.constant 0 : index
    %7 = vector.load %arg5[%c0_3, %c0_4] : memref<8x128xf32, #tpu.memory_space<vmem>>, vector<8x128xf32>
    %8 = arith.addf %7, %5 : vector<8x128xf32>
    %c0_5 = arith.constant 0 : index
    %c0_6 = arith.constant 0 : index
    %9 = vector.load %arg5[%c0_5, %c0_6] : memref<8x128xf32, #tpu.memory_space<vmem>>, vector<8x128xf32>
    tpu.vector_store %arg5[%c0_5, %c0_6], %8 {strides = array<i32>} : memref<8x128xf32, #tpu.memory_space<vmem>>, vector<8x128xf32>,
    %c0_7 = arith.constant 0 : index
    %c0_8 = arith.constant 0 : index
    %10 = vector.load %arg6[%c0_7, %c0_8] : memref<8x128xf32, #tpu.memory_space<vmem>>, vector<8x128xf32>
    %11 = arith.maximumf %10, %6 : vector<8x128xf32>
    %c0_9 = arith.constant 0 : index
    %c0_10 = arith.constant 0 : index
    %12 = vector.load %arg6[%c0_9, %c0_10] : memref<8x128xf32, #tpu.memory_space<vmem>>, vector<8x128xf32>
    tpu.vector_store %arg6[%c0_9, %c0_10], %11 {strides = array<i32>} : memref<8x128xf32, #tpu.memory_space<vmem>>, vector<8x128xf32>,
    %c0_i32_11 = arith.constant 0 : i32
    %13 = arith.cmpi eq, %arg1, %c0_i32_11 : i32
    %14 = arith.extui %13 : i1 to i32
    %c0_i32_12 = arith.constant 0 : i32
    %15 = arith.cmpi ne, %14, %c0_i32_12 : i32
    scf.if %15 {
      %c0_13 = arith.constant 0 : index
      %c0_14 = arith.constant 0 : index
      %16 = vector.load %arg5[%c0_13, %c0_14] : memref<8x128xf32, #tpu.memory_space<vmem>>, vector<8x128xf32>
      %cst = arith.constant dense<0.000000e+00> : vector<8xf32>
      %17 = vector.multi_reduction <add>, %16, %cst [1] : vector<8x128xf32> to vector<8xf32>
      %18 = vector.shape_cast %17 : vector<8xf32> to vector<8x1xf32>
      %c0_15 = arith.constant 0 : index
      %c0_16 = arith.constant 0 : index
      %19 = vector.load %arg3[%c0_15, %c0_16] : memref<8x1xf32, #tpu.memory_space<vmem>>, vector<8x1xf32>
      tpu.vector_store %arg3[%c0_15, %c0_16], %18 {strides = array<i32>} : memref<8x1xf32, #tpu.memory_space<vmem>>, vector<8x1xf32>,
      %c0_17 = arith.constant 0 : index
      %c0_18 = arith.constant 0 : index
      %20 = vector.load %arg6[%c0_17, %c0_18] : memref<8x128xf32, #tpu.memory_space<vmem>>, vector<8x128xf32>
      %cst_19 = arith.constant dense<0xFF800000> : vector<8xf32>
      %21 = vector.multi_reduction <maximumf>, %20, %cst_19 [1] : vector<8x128xf32> to vector<8xf32>
      %22 = vector.shape_cast %21 : vector<8xf32> to vector<8x1xf32>
      %c0_20 = arith.constant 0 : index
      %c0_21 = arith.constant 0 : index
      %23 = vector.load %arg4[%c0_20, %c0_21] : memref<8x1xf32, #tpu.memory_space<vmem>>, vector<8x1xf32>
      tpu.vector_store %arg4[%c0_20, %c0_21], %22 {strides = array<i32>} : memref<8x1xf32, #tpu.memory_space<vmem>>, vector<8x1xf32>,
    } else {
    }
    return
  }
  func.func @transform_0(%arg0: i32, %arg1: i32) -> (i32, i32) {
    %c0_i32 = arith.constant 0 : i32
    return %arg0, %arg1 : i32, i32
  }
  func.func @transform_1(%arg0: i32, %arg1: i32) -> (i32, i32) {
    %c0_i32 = arith.constant 0 : i32
    %c0_i32_0 = arith.constant 0 : i32
    return %arg0, %c0_i32 : i32, i32
  }
  func.func @transform_2(%arg0: i32, %arg1: i32) -> (i32, i32) {
    %c0_i32 = arith.constant 0 : i32
    %c0_i32_0 = arith.constant 0 : i32
    return %arg0, %c0_i32 : i32, i32
  }
}

</mosaic_0001>

<bundles_post_ra>
// kernel: tpu_custom_call.1
= control target key start
LH: loop header
LB: loop body
LE: loop exit
PB: predicated region body
PF: predicated region fallthrough
CT: control target
= control target key end

     0   :  { %8 = vsyncpa [#allocation5], 0  ;;  %s82_s9 = smov [#allocation4]   ;;  %s107_s0 = inlined_call_operand.hbm [shape: f32[8,256], index: 0, kind: input, shape index: {}]   ;;  %s108_s1 = inlined_call_operand.vmem [shape: f32[8,1], index: 1, kind: output, shape index: {0}]   ;;  %s109_s2 = inlined_call_operand.vmem [shape: f32[8,1], index: 2, kind: output, shape index: {1}]  }
   0x1   :  { %s15_s10 = sshll.u32 %s82_s9, 4  ;;  %s16_s10 = int_to_ptr.vmem [resolvable:$true] %s15_s10 }
   0x2   :  { %s68_s11 = scalar_lea.vmem %s16_s10, 256  ;;  %p73_p1 = scmp.lt.s32.totalorder %s16_s10, %s16_s10 }
   0x3   :  { %p69_p0 = scmp.ne.s32.totalorder %s16_s10, %s68_s11  ;;  %p74_p2 = scmp.lt.s32.totalorder %s68_s11, %s68_s11 }
   0x5   :  { %p75_p3 = por %p74_p2, %p73_p1 }
   0x7   :  { %p76_p4 = pnand %p75_p3, %p69_p0 }
   0x9   :  { %79 = shalt.err (!%p76_p4)
}
   0xa   :  { %18 = dma.hbm_to_vmem [thread:$0]  %s107_s0, 256, %s16_s10, [#allocation5]  }
   0xb   :  { %80 = dma.done.wait [#allocation5], 256  }
   0xc   :  { %81 = vsyncadd [#allocation5], 4294967040  ;;  %v28_v0 = vld [vmem:[#allocation4] sm:$0xff]  ;;  %v29_v1 = vld [vmem:[#allocation4 + $0x8] sm:$0xff]  ;;  %vm44_vm0 = vcmask 7168  }
   0xd   :  { %v30_v2 = vadd.f32 %v29_v1, %v28_v0  ;;  %v31_v3 = vmax.f32 %v28_v0, %v29_v1 }
   0xf   :  { %42 = vadd.xlane.f32.xlu0 %v30_v2 }
  0x13   :  { %47 = vmax.xlane.f32.xlu0 %v31_v3 }
  0x98   :  { %v43_v4 = vpop.xlane.xlu0 %42 }
  0x99   :  { %45 = vst.msk [vmem:[%s108_s1] sm:$0xff] %vm44_vm0, %v43_v4 }
  0x9c   :  { %v48_v5 = vpop.xlane.xlu0 %47 }
  0x9d   :  { %49 = vst.msk [vmem:[%s109_s2] sm:$0xff] %vm44_vm0, %v48_v5 }
  0x9e   :  { %58 = vsyncpa [#allocation5], 1 }

</bundles_post_ra>
